<compile_context>
chip_gen: v6e
topology: v6e:2x2x1
jax: 0.10.0
libtpu: 0.0.40
codegen_flags: <defaults>
</compile_context>

<pallas_src>
import jax
import jax.numpy as jnp
from jax import lax
from jax.experimental import pallas as pl
from jax.experimental.pallas import tpu as pltpu

EPS = 1e-6
LANE = 128
SUBLANE = 8


def _round_up(a, b):
    return ((a + b - 1) // b) * b


def _chip_info():
    """Best-effort (tensorcores_per_chip, device_kind) detection."""
    kind = ""
    try:
        kind = jax.devices()[0].device_kind.lower()
    except Exception:
        pass
    cores = 0
    try:
        info = pltpu.get_tpu_info()
        for attr in ("num_cores", "core_count", "num_tensorcores",
                     "tensorcores_per_chip", "cores_per_chip"):
            v = getattr(info, attr, None)
            if isinstance(v, int) and v > 0:
                cores = v
                break
    except Exception:
        pass
    if cores <= 0:
        cores = 2 if "v7" in kind else 1   # v5e/v6e: 1 TC, v7x: 2 TCs
    return cores, kind


def _make_kernel(n, tile_rows, tiles_per_split, needs_mask, first_masked_tile):
    elems_per_tile = tile_rows * LANE

    def _accum(out_ref, err):
        # Per-vreg partial reduction: (T,128) -> (T//8, 8, 128) -> (8, 128).
        # Pure VPU adds; cross-lane XLU work deferred to the wrapper epilogue.
        out_ref[...] += jnp.sum(err.reshape(-1, SUBLANE, LANE), axis=0)

    def kernel(x_ref, y_ref, out_ref):
        i = pl.program_id(1)  # reduction axis (innermost, "arbitrary")

        @pl.when(i == 0)
        def _():
            out_ref[...] = jnp.zeros_like(out_ref)

        # NOTE: for bf16 inputs a bf16 subtract + single upcast would shave a
        # VALU op/vreg; kept in f32 for exact parity with the torch forward.
        d = x_ref[...].astype(jnp.float32) - y_ref[...].astype(jnp.float32)
        err = jnp.sqrt(d * d + jnp.float32(EPS))

        if not needs_mask:
            _accum(out_ref, err)
        else:
            tile = pl.program_id(0) * tiles_per_split + i

            @pl.when(tile < first_masked_tile)          # hot path: no mask
            def _():
                _accum(out_ref, err)

            @pl.when(tile >= first_masked_tile)         # edge tiles only
            def _():
                # Zero contributions from logical positions >= n (partial-block
                # garbage, lane-tail padding, clamped duplicate tiles).
                # int32 index math: valid for coverage < 2^31 elements
                # (checked in the wrapper).
                base = tile * elems_per_tile
                row_ids = lax.broadcasted_iota(jnp.int32, (tile_rows, LANE), 0)
                lane_ids = lax.broadcasted_iota(jnp.int32, (tile_rows, LANE), 1)
                idx = base + row_ids * LANE + lane_ids
                _accum(out_ref, jnp.where(idx < n, err, jnp.float32(0.0)))

    return kernel


def l1_charbonnier_loss(x, y, *, tile_rows=None, num_splits=None):
    """Exactly reproduces torch: mean(sqrt((x - y)**2 + 1e-6)) as f32 scalar."""
    assert x.shape == y.shape, "X and Y must have the same shape"
    n = x.size
    if n == 0:
        return jnp.float32(jnp.nan)  # matches torch.mean of an empty tensor

    cores, kind = _chip_info()
    if tile_rows is None:
        # 4 MiB f32 / input block on v7x, 2 MiB on v5e/v6e.
        tile_rows = 8192 if "v7" in kind else 4096
    if num_splits is None:
        num_splits = cores  # one partial-sum block per TensorCore (2 on v7x)

    rows = pl.cdiv(n, LANE)

    # Lane-dense 2D view of the flattened inputs, native dtype. Zero-copy
    # reshape when n % 128 == 0 (common NCHW case); otherwise pad only the
    # ragged (<128 element) tail and let the in-kernel mask exclude it.
    def to_slab(a):
        flat = a.reshape(-1)
        if n % LANE != 0:
            flat = jnp.pad(flat, (0, rows * LANE - n))
        return flat.reshape(rows, LANE)

    xs, ys = to_slab(x), to_slab(y)

    # ---- Tiling ----------------------------------------------------------
    num_splits = max(1, num_splits)
    if rows < num_splits * SUBLANE:
        num_splits = 1
    # Initial tile: multiple of 8 rows, at most one split's share of the rows.
    max_tile = _round_up(pl.cdiv(rows, num_splits), SUBLANE)
    tile0 = max(SUBLANE, min(_round_up(tile_rows, SUBLANE), max_tile))
    tiles_per_split = pl.cdiv(pl.cdiv(rows, tile0), num_splits)
    # Re-fit the tile so num_splits * tiles_per_split tiles cover `rows` as
    # tightly as possible (normally: no clamped duplicates, no redundant DMA).
    tile_rows = max(
        SUBLANE,
        _round_up(pl.cdiv(rows, num_splits * tiles_per_split), SUBLANE))
    row_tiles = pl.cdiv(rows, tile_rows)          # number of valid block idxs
    total_tiles = num_splits * tiles_per_split
    elems_per_tile = tile_rows * LANE

    needs_clamp = total_tiles > row_tiles         # degenerate corner case only
    needs_mask = total_tiles * elems_per_tile != n
    first_masked_tile = n // elems_per_tile       # first tile touching idx >= n

    if needs_mask and total_tiles * elems_per_tile >= 2**31:
        # TODO(synk): int32 iota mask overflows for >= 2^31 covered elements;
        # would need a 64-bit / split-index mask (far beyond realistic losses).
        raise ValueError(
            "l1_charbonnier_loss: masked tail path limited to < 2^31 elements")

    if needs_clamp:
        # Keep the DMA in-bounds; the mask zeroes the duplicated data.
        def in_map(s, i):
            return (jnp.minimum(s * tiles_per_split + i, row_tiles - 1), 0)
    else:
        def in_map(s, i):
            return (s * tiles_per_split + i, 0)

    kernel = _make_kernel(n, tile_rows, tiles_per_split, needs_mask,
                          first_masked_tile)
    itemsize = jnp.dtype(x.dtype).itemsize + jnp.dtype(y.dtype).itemsize

    partials = pl.pallas_call(
        kernel,
        out_shape=jax.ShapeDtypeStruct((num_splits * SUBLANE, LANE),
                                       jnp.float32),
        grid_spec=pltpu.PrefetchScalarGridSpec(
            num_scalar_prefetch=0,
            grid=(num_splits, tiles_per_split),
            in_specs=[
                pl.BlockSpec((tile_rows, LANE), in_map),
                pl.BlockSpec((tile_rows, LANE), in_map),
            ],
            out_specs=pl.BlockSpec((SUBLANE, LANE), lambda s, i: (s, 0)),
        ),
        # TODO(synk): if plain "parallel" does not shard the leading axis over
        # both v7x TensorCores, switch it to pltpu.CORE_PARALLEL.
        compiler_params=pltpu.CompilerParams(
            dimension_semantics=("parallel", "arbitrary"),
            vmem_limit_bytes=32 * 1024 * 1024,
        ),
        cost_estimate=pl.CostEstimate(
            flops=5 * n,
            transcendentals=n,
            bytes_accessed=n * itemsize + num_splits * SUBLANE * LANE * 4,
        ),
    )(xs, ys)

    # Final cross-lane/sublane reduce + mean in plain JAX (tiny epilogue).
    return jnp.sum(partials, dtype=jnp.float32) / jnp.float32(n)


if __name__ == "__main__":
    key = jax.random.PRNGKey(0)
    kx, ky = jax.random.split(key)

    def ref_loss(X, Y):
        d = X.astype(jnp.float32) - Y.astype(jnp.float32)
        return jnp.mean(jnp.sqrt(d * d + jnp.float32(EPS)))

    # 1) Standard NCHW case (lane-aligned, unmasked hot path).
    shape = (2, 4, 16, 16)
    X = jax.random.normal(kx, shape, dtype=jnp.float32)
    Y = jax.random.normal(ky, shape, dtype=jnp.float32)
    loss = jax.block_until_ready(l1_charbonnier_loss(X, Y))
    assert jnp.allclose(loss, ref_loss(X, Y), rtol=1e-5, atol=1e-6), loss

    # 2) Ragged element count (exercises the pl.when-gated tail-mask path).
    k1, k2 = jax.random.split(kx)
    Xr = jax.random.normal(k1, (3, 7, 11), dtype=jnp.float32)
    Yr = jax.random.normal(k2, (3, 7, 11), dtype=jnp.float32)
    loss_r = jax.block_until_ready(l1_charbonnier_loss(Xr, Yr))
    assert jnp.allclose(loss_r, ref_loss(Xr, Yr), rtol=1e-5, atol=1e-6), loss_r

    # 3) Multi-tile accumulation (small tile override -> several grid steps).
    k3, k4 = jax.random.split(ky)
    Xm = jax.random.normal(k3, (2, 3, 32, 32), dtype=jnp.float32)
    Ym = jax.random.normal(k4, (2, 3, 32, 32), dtype=jnp.float32)
    loss_m = jax.block_until_ready(l1_charbonnier_loss(Xm, Ym, tile_rows=8))
    assert jnp.allclose(loss_m, ref_loss(Xm, Ym), rtol=1e-5, atol=1e-6), loss_m

    print("KERNEL_OK")
</pallas_src>

<mosaic_0001>
module attributes {stable_mosaic.version = 11 : i64} {
  func.func @kernel(%arg0: i32, %arg1: i32, %arg2: memref<16x128xf32, #tpu.memory_space<vmem>>, %arg3: memref<16x128xf32, #tpu.memory_space<vmem>>, %arg4: memref<8x128xf32, #tpu.memory_space<vmem>>) attributes {dimension_semantics = [#tpu.dimension_semantics<parallel>, #tpu.dimension_semantics<arbitrary>], iteration_bounds = array<i64: 1, 1>, scalar_prefetch = 0 : i64, scratch_operands = 0 : i64, tpu.core_type = #tpu.core_type<tc>, window_params = [{transform_indices = @transform_0, window_bounds = array<i64: 16, 128>}, {transform_indices = @transform_1, window_bounds = array<i64: 16, 128>}, {transform_indices = @transform_2, window_bounds = array<i64: 8, 128>}]} {
    %c0_i32 = arith.constant 0 : i32
    %0 = arith.cmpi eq, %arg1, %c0_i32 : i32
    %1 = arith.extui %0 : i1 to i32
    %c0_i32_0 = arith.constant 0 : i32
    %2 = arith.cmpi ne, %1, %c0_i32_0 : i32
    scf.if %2 {
      %cst_9 = arith.constant 0.000000e+00 : f32
      %15 = vector.broadcast %cst_9 : f32 to vector<8x128xf32>
      %c0_10 = arith.constant 0 : index
      %c0_11 = arith.constant 0 : index
      %16 = vector.load %arg4[%c0_10, %c0_11] : memref<8x128xf32, #tpu.memory_space<vmem>>, vector<8x128xf32>
      tpu.vector_store %arg4[%c0_10, %c0_11], %15 {strides = array<i32>} : memref<8x128xf32, #tpu.memory_space<vmem>>, vector<8x128xf32>,
    } else {
    }
    %c0 = arith.constant 0 : index
    %c0_1 = arith.constant 0 : index
    %3 = vector.load %arg2[%c0, %c0_1] : memref<16x128xf32, #tpu.memory_space<vmem>>, vector<16x128xf32>
    %c0_2 = arith.constant 0 : index
    %c0_3 = arith.constant 0 : index
    %4 = vector.load %arg3[%c0_2, %c0_3] : memref<16x128xf32, #tpu.memory_space<vmem>>, vector<16x128xf32>
    %5 = arith.subf %3, %4 : vector<16x128xf32>
    %6 = arith.mulf %5, %5 : vector<16x128xf32>
    %cst = arith.constant 9.99999997E-7 : f32
    %7 = vector.broadcast %cst : f32 to vector<16x128xf32>
    %8 = arith.addf %6, %7 : vector<16x128xf32>
    %9 = math.sqrt %8 : vector<16x128xf32>
    %c0_4 = arith.constant 0 : index
    %c0_5 = arith.constant 0 : index
    %10 = vector.load %arg4[%c0_4, %c0_5] : memref<8x128xf32, #tpu.memory_space<vmem>>, vector<8x128xf32>
    %11 = vector.shape_cast %9 : vector<16x128xf32> to vector<2x8x128xf32>
    %cst_6 = arith.constant dense<0.000000e+00> : vector<8x128xf32>
    %12 = vector.multi_reduction <add>, %11, %cst_6 [0] : vector<2x8x128xf32> to vector<8x128xf32>
    %13 = arith.addf %10, %12 : vector<8x128xf32>
    %c0_7 = arith.constant 0 : index
    %c0_8 = arith.constant 0 : index
    %14 = vector.load %arg4[%c0_7, %c0_8] : memref<8x128xf32, #tpu.memory_space<vmem>>, vector<8x128xf32>
    tpu.vector_store %arg4[%c0_7, %c0_8], %13 {strides = array<i32>} : memref<8x128xf32, #tpu.memory_space<vmem>>, vector<8x128xf32>,
    return
  }
  func.func @transform_0(%arg0: i32, %arg1: i32) -> (i32, i32) {
    %c1_i32 = arith.constant 1 : i32
    %0 = arith.muli %arg0, %c1_i32 : i32
    %1 = arith.addi %0, %arg1 : i32
    %c0_i32 = arith.constant 0 : i32
    %c0_i32_0 = arith.constant 0 : i32
    return %1, %c0_i32 : i32, i32
  }
  func.func @transform_1(%arg0: i32, %arg1: i32) -> (i32, i32) {
    %c1_i32 = arith.constant 1 : i32
    %0 = arith.muli %arg0, %c1_i32 : i32
    %1 = arith.addi %0, %arg1 : i32
    %c0_i32 = arith.constant 0 : i32
    %c0_i32_0 = arith.constant 0 : i32
    return %1, %c0_i32 : i32, i32
  }
  func.func @transform_2(%arg0: i32, %arg1: i32) -> (i32, i32) {
    %c0_i32 = arith.constant 0 : i32
    %c0_i32_0 = arith.constant 0 : i32
    return %arg0, %c0_i32 : i32, i32
  }
}

</mosaic_0001>

<bundles_post_ra>
// kernel: tpu_custom_call.1
= control target key start
LH: loop header
LB: loop body
LE: loop exit
PB: predicated region body
PF: predicated region fallthrough
CT: control target
= control target key end

     0   :  { %7 = vsyncpa [#allocation3], 0  ;;  %s206_s0 = inlined_call_operand.hbm [shape: f32[16,128], index: 0, kind: input, shape index: {}]   ;;  %s207_s1 = inlined_call_operand.hbm [shape: f32[16,128], index: 1, kind: input, shape index: {}]   ;;  %s208_s2 = inlined_call_operand.hbm [shape: f32[8,128], index: 2, kind: output, shape index: {}]  }
   0x1   :  { %8 = vsyncpa [#allocation6], 0 }
   0x2   :  { %9 = vsyncpa [#allocation4], 0  ;;  %s177_s9 = smov [#allocation2]  }
   0x3   :  { %s19_s10 = sshll.u32 %s177_s9, 4  ;;  %s20_s10 = int_to_ptr.vmem [resolvable:$true] %s19_s10 }
   0x4   :  { %s119_s11 = scalar_lea.vmem %s20_s10, 256  ;;  %p124_p1 = scmp.lt.s32.totalorder %s20_s10, %s20_s10 }
   0x5   :  { %p120_p0 = scmp.ne.s32.totalorder %s20_s10, %s119_s11  ;;  %p125_p2 = scmp.lt.s32.totalorder %s119_s11, %s119_s11 }
   0x7   :  { %p126_p3 = por %p125_p2, %p124_p1 }
   0x9   :  { %p127_p4 = pnand %p126_p3, %p120_p0 }
   0xb   :  { %130 = shalt.err (!%p127_p4)
}
   0xc   :  { %s178_s12 = smov 128   ;;  %s179_s13 = smov 8  }
   0xd   :  { %25 = dma.hbm_to_vmem [thread:$0]  %s206_s0, 256, %s20_s10, [#allocation3], %s178_s12, %s178_s12, %s179_s13  }
   0xe   :  { %s180_s16 = smov [#allocation5]  }
   0xf   :  { %s35_s17 = sshll.u32 %s180_s16, 4  ;;  %s36_s17 = int_to_ptr.vmem [resolvable:$true] %s35_s17 }
  0x10   :  { %s139_s18 = scalar_lea.vmem %s36_s17, 256  ;;  %p144_p6 = scmp.lt.s32.totalorder %s36_s17, %s36_s17 }
  0x11   :  { %p140_p5 = scmp.ne.s32.totalorder %s36_s17, %s139_s18  ;;  %p145_p7 = scmp.lt.s32.totalorder %s139_s18, %s139_s18 }
  0x13   :  { %p146_p8 = por %p145_p7, %p144_p6 }
  0x15   :  { %p147_p9 = pnand %p146_p8, %p140_p5 }
  0x17   :  { %150 = shalt.err (!%p147_p9)
}
  0x18   :  { %41 = dma.hbm_to_vmem [thread:$0]  %s207_s1, 256, %s36_s17, [#allocation6], %s178_s12, %s178_s12, %s179_s13  }
  0x19   :  { %171 = dma.done.wait [#allocation3], 256  }
  0x1a   :  { %172 = vsyncadd [#allocation3], 4294967040 }
  0x1b   :  { %173 = dma.done.wait [#allocation6], 256  }
  0x1c   :  { %174 = vsyncadd [#allocation6], 4294967040  ;;  %v57_v0 = vld [vmem:[#allocation2] sm:$0xff]  ;;  %v58_v1 = vld [vmem:[#allocation2 + $0x8] sm:$0xff]  ;;  %s181_s0 = smov [#allocation7]  }
  0x1d   :  { %v59_v2 = vld [vmem:[#allocation5] sm:$0xff]  ;;  %v60_v3 = vld [vmem:[#allocation5 + $0x8] sm:$0xff]  ;;  %s91_s1 = sshll.u32 %s181_s0, 4  ;;  %s92_s1 = int_to_ptr.vmem [resolvable:$true] %s91_s1 }
  0x1e   :  { %v61_v4 = vsub.f32 %v57_v0, %v59_v2  ;;  %v62_v5 = vsub.f32 %v58_v1, %v60_v3  ;;  %s151_s21 = scalar_lea.vmem %s92_s1, 128  ;;  %p156_p11 = scmp.lt.s32.totalorder %s92_s1, %s92_s1 }
  0x1f   :  { %p152_p10 = scmp.ne.s32.totalorder %s92_s1, %s151_s21  ;;  %p157_p12 = scmp.lt.s32.totalorder %s151_s21, %s151_s21 }
  0x20   :  { %v63_v6 = vmul.f32 %v61_v4, %v61_v4  ;;  %v64_v7 = vmul.f32 %v62_v5, %v62_v5 }
  0x21   :  { %p158_p13 = por %p157_p12, %p156_p11 }
  0x22   :  { %v65_v8 = vadd.f32 1e-06, %v63_v6  ;;  %v66_v9 = vadd.f32 1e-06, %v64_v7 }
  0x23   :  { %p159_p0 = pnand %p158_p13, %p152_p10 }
  0x24   :  { %107 = vrsqrt.f32 %v65_v8  ;;  %vm69_vm0 = vcmp.eq.f32.partialorder %v65_v8, inf  ;;  %v72_v11 = vand.u32 2147483648, %v65_v8  ;;  %vm71_vm1 = vcmp.eq.f32.partialorder %v65_v8, 0.0 }
  0x25   :  { %109 = vrsqrt.f32 %v66_v9  ;;  %vm76_vm2 = vcmp.eq.f32.partialorder %v66_v9, inf  ;;  %v79_v14 = vand.u32 2147483648, %v66_v9  ;;  %vm78_vm3 = vcmp.eq.f32.partialorder %v66_v9, 0.0 }
  0x31   :  { %v108_v10 = vpop.eup %107 }
  0x32   :  { %v110_v12 = vpop.eup %109  ;;  %v68_v13 = vmul.f32 %v108_v10, %v65_v8 }
  0x33   :  { %v75_v15 = vmul.f32 %v110_v12, %v66_v9 }
  0x34   :  { %v70_v16 = vsel %vm69_vm0, %v65_v8, %v68_v13 }
  0x35   :  { %v73_v17 = vsel %vm71_vm1, %v72_v11, %v70_v16  ;;  %v77_v18 = vsel %vm76_vm2, %v66_v9, %v75_v15 }
  0x36   :  { %v80_v19 = vsel %vm78_vm3, %v79_v14, %v77_v18 }
  0x37   :  { %v82_v20 = vadd.f32 %v80_v19, %v73_v17 }
  0x39   :  { %84 = vst [vmem:[#allocation7] sm:$0xff] %v82_v20 }
  0x3a   :  { %162 = shalt.err (!%p159_p0)
}
  0x3b   :  { %94 = dma.vmem_to_hbm [thread:$0]  %s92_s1, 128, %s208_s2, [#allocation4]  }
  0x3c   :  { %175 = dma.done.wait [#allocation4], 128  }
  0x3d   :  { %176 = vsyncadd [#allocation4], 4294967168 }
  0x3e   :  { %98 = vsyncpa [#allocation3], 1 }
  0x3f   :  { %99 = vsyncpa [#allocation6], 1 }
  0x40   :  { %100 = vsyncpa [#allocation4], 1 }

</bundles_post_ra>
